<compile_context>
chip_gen: v5e
topology: v5e:2x2
jax: 0.10.0
libtpu: 0.0.40
codegen_flags: <defaults>
</compile_context>

<pallas_src>
import functools

import jax
import jax.numpy as jnp
import numpy as np
from jax.experimental import pallas as pl
from jax.experimental.pallas import tpu as pltpu

_LANES = 128
_SUBLANES = 8
# Per-grid-step VMEM budget (bytes) for input + output blocks, single buffer.
# Double-buffering doubles this; keep total comfortably under the default
# scoped-VMEM limit (16 MiB on v5e, 32 MiB on v6e/v7x).
_VMEM_BLOCK_BUDGET = 6 * 1024 * 1024


def _legendre_kernel(x_ref, o_ref, *, degree: int):
    # x_ref block: (TR, 128); o_ref block: (degree + 1, TR, 128)
    x = x_ref[...]                       # (TR, 128) float32
    p_m = jnp.ones_like(x)               # P_0 = 1
    o_ref[0] = p_m
    if degree > 0:
        p = x                            # P_1 = x
        o_ref[1] = p
        for k in range(1, degree):       # static unrolled; degree is small
            a = (2.0 * k + 1.0) / (k + 1.0)
            b = float(k) / (k + 1.0)
            p_p = a * x * p - b * p_m    # pure VPU work, constants folded
            o_ref[k + 1] = p_p
            p_m, p = p, p_p


def _pick_tile_rows(rows_pad: int, degree: int, tile_rows_cap: int) -> int:
    """Largest sublane-aligned row tile that fits the VMEM block budget."""
    bytes_per_row = (degree + 2) * _LANES * 4        # 1 input + (degree+1) output rows, f32
    tr = _VMEM_BLOCK_BUDGET // max(bytes_per_row, 1)
    tr = min(tr, tile_rows_cap, rows_pad)
    tr = max(_SUBLANES, (tr // _SUBLANES) * _SUBLANES)
    return tr


def legendre_pallas(x: jax.Array, degree: int, *, tile_rows: int = 1024) -> jax.Array:
    """Evaluate Legendre polynomials P_0..P_degree at every element of x.

    Returns an array of shape (x.size, degree + 1), float32 — identical to
    the PyTorch module's forward output.
    """
    if degree < 0:
        raise ValueError("degree must be >= 0")

    x_flat = jnp.asarray(x, jnp.float32).reshape(-1)
    n = x_flat.shape[0]

    # Pad the flat length to a multiple of 8*128 so the lane-dense (rows, 128)
    # view has sublane-aligned rows. Pad amount is at most 1023 elements.
    rows = pl.cdiv(max(n, 1), _LANES)
    rows_pad = max(_SUBLANES, ((rows + _SUBLANES - 1) // _SUBLANES) * _SUBLANES)
    n_pad = rows_pad * _LANES
    if n_pad != n:
        x_flat = jnp.pad(x_flat, (0, n_pad - n))
    x2d = x_flat.reshape(rows_pad, _LANES)

    tr = _pick_tile_rows(rows_pad, degree, tile_rows)
    grid = (pl.cdiv(rows_pad, tr),)

    out = pl.pallas_call(
        functools.partial(_legendre_kernel, degree=degree),
        out_shape=jax.ShapeDtypeStruct((degree + 1, rows_pad, _LANES), jnp.float32),
        grid=grid,
        in_specs=[pl.BlockSpec((tr, _LANES), lambda i: (i, 0))],
        out_specs=pl.BlockSpec((degree + 1, tr, _LANES), lambda i: (0, i, 0)),
        compiler_params=pltpu.CompilerParams(
            dimension_semantics=("parallel",),
        ),
    )(x2d)

    # (degree+1, rows_pad, 128) -> (degree+1, n_pad) -> (n_pad, degree+1) -> (n, degree+1)
    out = out.reshape(degree + 1, n_pad).T
    return out[:n]


def _legendre_reference(x: np.ndarray, degree: int) -> np.ndarray:
    """Pure-numpy reference mirroring the PyTorch implementation."""
    x = x.astype(np.float32).reshape(-1, 1)
    cols = [np.ones_like(x)]
    if degree > 0:
        cols.append(x)
        p_m, p = cols[0], x
        for ii in range(1, degree):
            p_p = ((2 * ii + 1) * x * p - ii * p_m) / (ii + 1)
            cols.append(p_p)
            p_m, p = p, p_p
    return np.concatenate(cols, axis=1)


if __name__ == "__main__":
    degree = 5  # PolyDegree for the synthetic module instance

    key = jax.random.PRNGKey(0)
    # Small input; the module flattens whatever it gets.
    x = jax.random.uniform(key, (2, 4, 16, 16), dtype=jnp.float32, minval=-1.0, maxval=1.0)

    y = legendre_pallas(x, degree)
    y = jax.block_until_ready(y)

    y_ref = _legendre_reference(np.asarray(x), degree)
    assert y.shape == y_ref.shape, (y.shape, y_ref.shape)
    assert np.allclose(np.asarray(y), y_ref, rtol=1e-5, atol=1e-5)

    print("KERNEL_OK")
</pallas_src>

<mosaic_0001>
module attributes {stable_mosaic.version = 11 : i64} {
  func.func @_legendre_kernel(%arg0: i32, %arg1: memref<16x128xf32, #tpu.memory_space<vmem>>, %arg2: memref<6x16x128xf32, #tpu.memory_space<vmem>>) attributes {dimension_semantics = [#tpu.dimension_semantics<parallel>], iteration_bounds = array<i64: 1>, scalar_prefetch = 0 : i64, scratch_operands = 0 : i64, tpu.core_type = #tpu.core_type<tc>, window_params = [{transform_indices = @transform_0, window_bounds = array<i64: 16, 128>}, {transform_indices = @transform_1, window_bounds = array<i64: 6, 16, 128>}]} {
    %c0 = arith.constant 0 : index
    %c0_0 = arith.constant 0 : index
    %0 = vector.load %arg1[%c0, %c0_0] : memref<16x128xf32, #tpu.memory_space<vmem>>, vector<16x128xf32>
    %cst = arith.constant 1.000000e+00 : f32
    %1 = vector.broadcast %cst : f32 to vector<16x128xf32>
    %c0_1 = arith.constant 0 : index
    %c0_2 = arith.constant 0 : index
    %c0_3 = arith.constant 0 : index
    %2 = vector.load %arg2[%c0_1, %c0_2, %c0_3] : memref<6x16x128xf32, #tpu.memory_space<vmem>>, vector<1x16x128xf32>
    %3 = vector.shape_cast %2 : vector<1x16x128xf32> to vector<16x128xf32>
    %4 = vector.shape_cast %1 : vector<16x128xf32> to vector<1x16x128xf32>
    tpu.vector_store %arg2[%c0_1, %c0_2, %c0_3], %4 {strides = array<i32>} : memref<6x16x128xf32, #tpu.memory_space<vmem>>, vector<1x16x128xf32>,
    %c1 = arith.constant 1 : index
    %c0_4 = arith.constant 0 : index
    %c0_5 = arith.constant 0 : index
    %5 = vector.load %arg2[%c1, %c0_4, %c0_5] : memref<6x16x128xf32, #tpu.memory_space<vmem>>, vector<1x16x128xf32>
    %6 = vector.shape_cast %5 : vector<1x16x128xf32> to vector<16x128xf32>
    %7 = vector.shape_cast %0 : vector<16x128xf32> to vector<1x16x128xf32>
    tpu.vector_store %arg2[%c1, %c0_4, %c0_5], %7 {strides = array<i32>} : memref<6x16x128xf32, #tpu.memory_space<vmem>>, vector<1x16x128xf32>,
    %cst_6 = arith.constant 1.500000e+00 : f32
    %8 = vector.broadcast %cst_6 : f32 to vector<16x128xf32>
    %9 = arith.mulf %8, %0 : vector<16x128xf32>
    %10 = arith.mulf %9, %0 : vector<16x128xf32>
    %cst_7 = arith.constant 5.000000e-01 : f32
    %11 = vector.broadcast %cst_7 : f32 to vector<16x128xf32>
    %12 = arith.mulf %11, %1 : vector<16x128xf32>
    %13 = arith.subf %10, %12 : vector<16x128xf32>
    %c2 = arith.constant 2 : index
    %c0_8 = arith.constant 0 : index
    %c0_9 = arith.constant 0 : index
    %14 = vector.load %arg2[%c2, %c0_8, %c0_9] : memref<6x16x128xf32, #tpu.memory_space<vmem>>, vector<1x16x128xf32>
    %15 = vector.shape_cast %14 : vector<1x16x128xf32> to vector<16x128xf32>
    %16 = vector.shape_cast %13 : vector<16x128xf32> to vector<1x16x128xf32>
    tpu.vector_store %arg2[%c2, %c0_8, %c0_9], %16 {strides = array<i32>} : memref<6x16x128xf32, #tpu.memory_space<vmem>>, vector<1x16x128xf32>,
    %cst_10 = arith.constant 1.66666663 : f32
    %17 = vector.broadcast %cst_10 : f32 to vector<16x128xf32>
    %18 = arith.mulf %17, %0 : vector<16x128xf32>
    %19 = arith.mulf %18, %13 : vector<16x128xf32>
    %cst_11 = arith.constant 0.666666686 : f32
    %20 = vector.broadcast %cst_11 : f32 to vector<16x128xf32>
    %21 = arith.mulf %20, %0 : vector<16x128xf32>
    %22 = arith.subf %19, %21 : vector<16x128xf32>
    %c3 = arith.constant 3 : index
    %c0_12 = arith.constant 0 : index
    %c0_13 = arith.constant 0 : index
    %23 = vector.load %arg2[%c3, %c0_12, %c0_13] : memref<6x16x128xf32, #tpu.memory_space<vmem>>, vector<1x16x128xf32>
    %24 = vector.shape_cast %23 : vector<1x16x128xf32> to vector<16x128xf32>
    %25 = vector.shape_cast %22 : vector<16x128xf32> to vector<1x16x128xf32>
    tpu.vector_store %arg2[%c3, %c0_12, %c0_13], %25 {strides = array<i32>} : memref<6x16x128xf32, #tpu.memory_space<vmem>>, vector<1x16x128xf32>,
    %cst_14 = arith.constant 1.750000e+00 : f32
    %26 = vector.broadcast %cst_14 : f32 to vector<16x128xf32>
    %27 = arith.mulf %26, %0 : vector<16x128xf32>
    %28 = arith.mulf %27, %22 : vector<16x128xf32>
    %cst_15 = arith.constant 7.500000e-01 : f32
    %29 = vector.broadcast %cst_15 : f32 to vector<16x128xf32>
    %30 = arith.mulf %29, %13 : vector<16x128xf32>
    %31 = arith.subf %28, %30 : vector<16x128xf32>
    %c4 = arith.constant 4 : index
    %c0_16 = arith.constant 0 : index
    %c0_17 = arith.constant 0 : index
    %32 = vector.load %arg2[%c4, %c0_16, %c0_17] : memref<6x16x128xf32, #tpu.memory_space<vmem>>, vector<1x16x128xf32>
    %33 = vector.shape_cast %32 : vector<1x16x128xf32> to vector<16x128xf32>
    %34 = vector.shape_cast %31 : vector<16x128xf32> to vector<1x16x128xf32>
    tpu.vector_store %arg2[%c4, %c0_16, %c0_17], %34 {strides = array<i32>} : memref<6x16x128xf32, #tpu.memory_space<vmem>>, vector<1x16x128xf32>,
    %cst_18 = arith.constant 1.800000e+00 : f32
    %35 = vector.broadcast %cst_18 : f32 to vector<16x128xf32>
    %36 = arith.mulf %35, %0 : vector<16x128xf32>
    %37 = arith.mulf %36, %31 : vector<16x128xf32>
    %cst_19 = arith.constant 8.000000e-01 : f32
    %38 = vector.broadcast %cst_19 : f32 to vector<16x128xf32>
    %39 = arith.mulf %38, %22 : vector<16x128xf32>
    %40 = arith.subf %37, %39 : vector<16x128xf32>
    %c5 = arith.constant 5 : index
    %c0_20 = arith.constant 0 : index
    %c0_21 = arith.constant 0 : index
    %41 = vector.load %arg2[%c5, %c0_20, %c0_21] : memref<6x16x128xf32, #tpu.memory_space<vmem>>, vector<1x16x128xf32>
    %42 = vector.shape_cast %41 : vector<1x16x128xf32> to vector<16x128xf32>
    %43 = vector.shape_cast %40 : vector<16x128xf32> to vector<1x16x128xf32>
    tpu.vector_store %arg2[%c5, %c0_20, %c0_21], %43 {strides = array<i32>} : memref<6x16x128xf32, #tpu.memory_space<vmem>>, vector<1x16x128xf32>,
    return
  }
  func.func @transform_0(%arg0: i32) -> (i32, i32) {
    %c0_i32 = arith.constant 0 : i32
    %c0_i32_0 = arith.constant 0 : i32
    return %arg0, %c0_i32 : i32, i32
  }
  func.func @transform_1(%arg0: i32) -> (i32, i32, i32) {
    %c0_i32 = arith.constant 0 : i32
    %c0_i32_0 = arith.constant 0 : i32
    %c0_i32_1 = arith.constant 0 : i32
    return %c0_i32, %arg0, %c0_i32_0 : i32, i32, i32
  }
}

</mosaic_0001>

<bundles_post_ra>
// kernel: tpu_custom_call.1
= control target key start
LH: loop header
LB: loop body
LE: loop exit
PB: predicated region body
PF: predicated region fallthrough
CT: control target
= control target key end

     0   :  { %6 = vsyncpa [#allocation3], 0  ;;  %s179_s0 = inlined_call_operand.hbm [shape: f32[16,128], index: 0, kind: input, shape index: {}]   ;;  %s180_s1 = inlined_call_operand.hbm [shape: f32[6,16,128], index: 1, kind: output, shape index: {}]  }
   0x1   :  { %7 = vsyncpa [#allocation4], 0  ;;  %s12_s8 = sshll.u32 %s179_s0, 4  ;;  %s152_s9 = smov [#allocation2]   ;;  %s13_s8 = int_to_ptr.hbm [resolvable:$true] %s12_s8 }
   0x2   :  { %s14_s10 = sshll.u32 %s152_s9, 4  ;;  %s153_s11 = smov 128   ;;  %s15_s10 = int_to_ptr.vmem [resolvable:$true] %s14_s10 }
   0x3   :  { %s154_s12 = smov 8  }
   0x4   :  { %20 = dma.hbm_to_vmem [thread:$0]  %s13_s8, 256, %s15_s10, [#allocation3], %s153_s11, %s153_s11, %s154_s12  }
   0x5   :  { %148 = dma.done.wait [#allocation3], 256  }
   0x6   :  { %149 = vsyncadd [#allocation3], 4294967040  ;;  %v155_v0 = vmov 1.0   ;;  %v25_v1 = vld [vmem:[#allocation2] sm:$0xff]  ;;  %v26_v2 = vld [vmem:[#allocation2 + $0x8] sm:$0xff]  ;;  %s156_s0 = smov [#allocation5]  }
   0x7   :  { %27 = vst [vmem:[#allocation5] sm:$0xff] %v155_v0  ;;  %v32_v3 = vmul.f32 1.5, %v25_v1  ;;  %v33_v4 = vmul.f32 1.5, %v26_v2  ;;  %v41_v7 = vmul.f32 1.6666666, %v25_v1  ;;  %v52_v15 = vmul.f32 1.75, %v25_v1 }
   0x8   :  { %28 = vst [vmem:[#allocation5 + $0x8] sm:$0xff] %v155_v0  ;;  %v42_v8 = vmul.f32 1.6666666, %v26_v2  ;;  %v45_v11 = vmul.f32 0.6666667, %v25_v1  ;;  %v53_v16 = vmul.f32 1.75, %v26_v2 }
   0x9   :  { %30 = vst [vmem:[#allocation5 + $0x10] sm:$0xff] %v25_v1  ;;  %v34_v5 = vmul.f32 %v32_v3, %v25_v1  ;;  %v35_v6 = vmul.f32 %v33_v4, %v26_v2  ;;  %v46_v12 = vmul.f32 0.6666667, %v26_v2  ;;  %v63_v23 = vmul.f32 1.8, %v25_v1  ;;  %s78_s13 = sshll.u32 %s156_s0, 4  ;;  %s79_s13 = int_to_ptr.vmem [resolvable:$true] %s78_s13 }
   0xa   :  { %31 = vst [vmem:[#allocation5 + $0x18] sm:$0xff] %v26_v2  ;;  %v64_v24 = vmul.f32 1.8, %v26_v2  ;;  %s80_s16 = sshll.u32 %s180_s1, 4  ;;  %s81_s16 = int_to_ptr.hbm [resolvable:$true] %s80_s16 }
   0xb   :  { %v93_v9 = vadd.f32 -0.5, %v34_v5  ;;  %v94_v10 = vadd.f32 -0.5, %v35_v6 }
   0xd   :  { %39 = vst [vmem:[#allocation5 + $0x20] sm:$0xff] %v93_v9  ;;  %v43_v13 = vmul.f32 %v93_v9, %v41_v7  ;;  %v44_v14 = vmul.f32 %v94_v10, %v42_v8  ;;  %v56_v19 = vmul.f32 0.75, %v93_v9  ;;  %v57_v20 = vmul.f32 0.75, %v94_v10 }
   0xe   :  { %40 = vst [vmem:[#allocation5 + $0x28] sm:$0xff] %v94_v10 }
   0xf   :  { %v47_v17 = vsub.f32 %v43_v13, %v45_v11  ;;  %v48_v18 = vsub.f32 %v44_v14, %v46_v12 }
  0x11   :  { %50 = vst [vmem:[#allocation5 + $0x30] sm:$0xff] %v47_v17  ;;  %v54_v21 = vmul.f32 %v52_v15, %v47_v17  ;;  %v55_v22 = vmul.f32 %v53_v16, %v48_v18  ;;  %v67_v27 = vmul.f32 0.8, %v47_v17  ;;  %v68_v28 = vmul.f32 0.8, %v48_v18 }
  0x12   :  { %51 = vst [vmem:[#allocation5 + $0x38] sm:$0xff] %v48_v18 }
  0x13   :  { %v58_v25 = vsub.f32 %v54_v21, %v56_v19  ;;  %v59_v26 = vsub.f32 %v55_v22, %v57_v20 }
  0x15   :  { %61 = vst [vmem:[#allocation5 + $0x40] sm:$0xff] %v58_v25  ;;  %v65_v29 = vmul.f32 %v63_v23, %v58_v25  ;;  %v66_v30 = vmul.f32 %v64_v24, %v59_v26 }
  0x16   :  { %62 = vst [vmem:[#allocation5 + $0x48] sm:$0xff] %v59_v26 }
  0x17   :  { %v69_v31 = vsub.f32 %v65_v29, %v67_v27  ;;  %v70_v32 = vsub.f32 %v66_v30, %v68_v28 }
  0x19   :  { %72 = vst [vmem:[#allocation5 + $0x50] sm:$0xff] %v69_v31 }
  0x1a   :  { %73 = vst [vmem:[#allocation5 + $0x58] sm:$0xff] %v70_v32 }
  0x1b   :  { %86 = dma.vmem_to_hbm [thread:$0]  %s79_s13, 1536, %s81_s16, [#allocation4], %s153_s11, %s153_s11, %s154_s12  }
  0x1c   :  { %150 = dma.done.wait [#allocation4], 1536  }
  0x1d   :  { %151 = vsyncadd [#allocation4], 4294965760 }
  0x1e   :  { %91 = vsyncpa [#allocation3], 1 }
  0x1f   :  { %92 = vsyncpa [#allocation4], 1 }

</bundles_post_ra>
